<compile_context>
chip_gen: v6e
topology: v6e:2x2x1
jax: 0.10.0
libtpu: 0.0.40
codegen_flags: <defaults>
</compile_context>

<pallas_src>
import math
import functools

import jax
import jax.numpy as jnp
from jax.experimental import pallas as pl
from jax.experimental.pallas import tpu as pltpu


def _round_up(v, m):
    return (v + m - 1) // m * m


def _vmem_capacity_bytes():
    """Generation-aware VMEM capacity (64 MiB/TC on v7x, 128 MiB on v5e/v6e)."""
    try:
        cap = getattr(pltpu.get_tpu_info(), "vmem_capacity_bytes", None)
        if cap:
            return int(cap)
    except Exception:
        pass
    return 64 * 1024 * 1024   # conservative fallback (safe on every generation)


def _cheb_kernel(xt_ref, lt_ref, w_ref, b_ref, o_ref, *, K, BB, C_in_p, use_bias):
    # xt_ref : (BB*C_in_p, Np)    batch-folded, channel-first input block (rows=(b,c), lanes=nodes)
    # lt_ref : (Np, Np)           transposed scaled/normalized Laplacian L^T (constant index_map
    #                             -> DMA'd once, VMEM-resident across grid steps)
    # w_ref  : (K, C_out, C_in_p) Chebyshev weights (channel-transposed, channel-padded)
    # b_ref  : (C_out, 1)
    # o_ref  : (BB, C_out, Np)    lane-dense output block (last dim = nodes, multiple of 128)
    dtype = xt_ref.dtype
    Np = xt_ref.shape[-1]

    def project(t, k):
        # per-k accumulation: out[b,o,n] += sum_c w[k,o,c] * T_k[b,c,n]
        tk = t.reshape(BB, C_in_p, Np)
        return jnp.einsum('oc,bcn->bon', w_ref[k], tk,
                          preferred_element_type=jnp.float32)

    t_prev = xt_ref[...]                       # T_0^T, native dtype
    acc = project(t_prev, 0)                   # (BB, C_out, Np) f32 accumulator

    if K > 1:
        lt = lt_ref[...]
        # T_1^T = T_0^T @ L^T ; cast the result back to the input dtype so the next
        # recursion matmul sees native (bf16-capable) MXU operands; f32 only accumulates.
        t_cur = jnp.dot(t_prev, lt, preferred_element_type=jnp.float32).astype(dtype)
        acc = acc + project(t_cur, 1)
        for k in range(2, K):
            # T_k^T = 2 * T_{k-1}^T @ L^T - T_{k-2}^T   (the 2* and the - stay on the VPU;
            # they are filler next to the (Np,Np) matmul)
            t_new = (2.0 * jnp.dot(t_cur, lt, preferred_element_type=jnp.float32)
                     - t_prev).astype(dtype)
            acc = acc + project(t_new, k)
            t_prev, t_cur = t_cur, t_new

    if use_bias:
        acc = acc + b_ref[...]                 # (C_out,1) broadcasts over (BB,C_out,Np)

    o_ref[...] = acc.astype(o_ref.dtype)


def cheb_conv_pallas(x, L_dense, weight, bias=None):
    """x: (B, N, C_in), L_dense: (N, N), weight: (K, C_in, C_out), bias: (C_out,) or None.

    Returns (B, N, C_out), matching the PyTorch module's output layout.
    Pass bf16 x / L_dense to halve the dominant Laplacian HBM stream (re-validate tolerance).
    """
    B, N, C_in = x.shape
    K, _, C_out = weight.shape
    use_bias = bias is not None
    dtype = x.dtype
    itemsize = jnp.dtype(dtype).itemsize

    LANE, SUBLANE = 128, 8
    Np = _round_up(N, LANE)
    C_in_p = _round_up(C_in, SUBLANE)

    # Row-block (batch-block) size: fold enough batches per grid step to feed the MXU
    # (~256 folded rows), while keeping BB an exact divisor of B.
    target_rows = 256
    BB = max(1, min(B, target_rows // C_in_p))
    while B % BB != 0:
        BB -= 1
    R = BB * C_in_p
    n_blocks = B // BB

    # (B, N, C_in) -> (B*C_in_p, Np): batch+channel folded onto sublanes, nodes on lanes.
    # Channel padding (zeros) is inert: padded weight columns are zero.
    xt = jnp.transpose(x, (0, 2, 1))                                   # (B, C_in, N)
    xt = jnp.pad(xt, ((0, 0), (0, C_in_p - C_in), (0, Np - N)))
    xt = xt.reshape(B * C_in_p, Np)

    # L^T, zero-padded; padding is inert through the three-term recursion.
    lt = jnp.pad(L_dense.astype(dtype).T, ((0, Np - N), (0, Np - N)))

    # Weights (K, C_in, C_out) -> (K, C_out, C_in_p) for the per-k channel contraction.
    w = jnp.pad(jnp.transpose(weight, (0, 2, 1)),
                ((0, 0), (0, 0), (0, C_in_p - C_in))).astype(dtype)
    bias_col = (bias if use_bias else jnp.zeros((C_out,), dtype)).reshape(C_out, 1).astype(dtype)

    kernel = functools.partial(_cheb_kernel, K=K, BB=BB, C_in_p=C_in_p, use_bias=use_bias)

    flops = int(2 * (K - 1) * (B * C_in_p) * Np * Np      # Chebyshev recursion matmuls
                + 2 * K * B * C_in_p * C_out * Np)        # per-k projections
    bytes_accessed = int(itemsize * (Np * Np + B * C_in_p * Np + B * C_out * Np
                                     + K * C_out * C_in_p + C_out))

    # VMEM budget: resident L^T + double-buffered xt/out blocks + live recursion state
    # (f32 upper bound) + f32 accumulator + weights, clamped to ~85% of the queried
    # per-TensorCore capacity (64 MiB on v7x, 128 MiB on v5e/v6e).
    need = (Np * Np * itemsize
            + 2 * R * Np * itemsize
            + 2 * BB * C_out * Np * itemsize
            + 3 * R * Np * 4
            + BB * C_out * Np * 4
            + (K * C_out * C_in_p + C_out) * itemsize)
    cap = int(0.85 * _vmem_capacity_bytes())
    vmem_limit = int(min(cap, max(16 * 1024 * 1024, need + (2 << 20))))

    out = pl.pallas_call(
        kernel,
        out_shape=jax.ShapeDtypeStruct((B, C_out, Np), dtype),
        grid=(n_blocks,),
        in_specs=[
            pl.BlockSpec((R, Np), lambda i: (i, 0)),                    # xt row block
            pl.BlockSpec((Np, Np), lambda i: (0, 0)),                   # L^T, resident
            pl.BlockSpec((K, C_out, C_in_p), lambda i: (0, 0, 0)),      # weights
            pl.BlockSpec((C_out, 1), lambda i: (0, 0)),                 # bias
        ],
        out_specs=pl.BlockSpec((BB, C_out, Np), lambda i: (i, 0, 0)),
        compiler_params=pltpu.CompilerParams(
            dimension_semantics=("parallel",),
            vmem_limit_bytes=vmem_limit),
        cost_estimate=pl.CostEstimate(flops=flops, transcendentals=0,
                                      bytes_accessed=bytes_accessed),
    )(xt, lt, w, bias_col)

    # (B, C_out, Np) -> (B, N, C_out), dropping node padding.
    return jnp.transpose(out[:, :, :N], (0, 2, 1))


def build_dense_laplacian(edge_index, edge_weight, num_nodes, dtype=jnp.float32):
    """Glue replicating the reference module exactly:
    remove_self_loops -> UNWEIGHTED degree of `row` (torch_geometric.utils.degree semantics,
    NOT the weighted degree of modern PyG ChebConv) -> lap = -d^-1/2 * w * d^-1/2 -> densify.
    """
    row, col = edge_index[0], edge_index[1]
    if edge_weight is None:
        edge_weight = jnp.ones((row.shape[0],), dtype=dtype)
    edge_weight = edge_weight.astype(dtype)
    keep = (row != col).astype(dtype)                       # remove_self_loops
    w = edge_weight * keep
    deg = jnp.zeros((num_nodes,), dtype).at[row].add(keep)  # unweighted edge count, as in the module
    dinv = jnp.where(deg > 0, jax.lax.rsqrt(deg), jnp.zeros_like(deg))
    lap = -dinv[row] * w * dinv[col]
    # spmm_batch_2 semantics: out[b, i] = sum_{e: row[e]==i} lap[e] * x[b, col[e]]  =>  L[i, j] += lap[e]
    L = jnp.zeros((num_nodes, num_nodes), dtype).at[row, col].add(lap)
    return L


def cheb_conv_reference(x, L, weight, bias):
    K = weight.shape[0]
    tx0 = x
    out = jnp.einsum('bnc,co->bno', tx0, weight[0])
    if K > 1:
        tx1 = jnp.einsum('nm,bmc->bnc', L, tx0)
        out = out + jnp.einsum('bnc,co->bno', tx1, weight[1])
        for k in range(2, K):
            tx2 = 2.0 * jnp.einsum('nm,bmc->bnc', L, tx1) - tx0
            out = out + jnp.einsum('bnc,co->bno', tx2, weight[k])
            tx0, tx1 = tx1, tx2
    if bias is not None:
        out = out + bias
    return out


if __name__ == "__main__":
    key = jax.random.PRNGKey(0)
    B, N, C_in, C_out, K_hops, E = 2, 16, 4, 8, 3, 48

    k_x, k_w, k_b, k_row, k_col, k_ew = jax.random.split(key, 6)

    x = jax.random.normal(k_x, (B, N, C_in), dtype=jnp.float32)

    # random directed graph without self loops (remove_self_loops semantics)
    row = jax.random.randint(k_row, (E,), 0, N)
    col = jax.random.randint(k_col, (E,), 0, N)
    col = jnp.where(col == row, (col + 1) % N, col)
    edge_index = jnp.stack([row, col], axis=0)
    edge_weight = jax.random.uniform(k_ew, (E,), minval=0.5, maxval=1.5, dtype=jnp.float32)

    # parameters, initialized like ChebConv.reset_parameters (uniform +-1/sqrt(K*C_in))
    stdv = 1.0 / math.sqrt(C_in * K_hops)
    weight = jax.random.uniform(k_w, (K_hops, C_in, C_out),
                                minval=-stdv, maxval=stdv, dtype=jnp.float32)
    bias = jax.random.uniform(k_b, (C_out,), minval=-stdv, maxval=stdv, dtype=jnp.float32)

    # glue: build dense scaled/normalized Laplacian from the edge list
    L = build_dense_laplacian(edge_index, edge_weight, N)

    out = cheb_conv_pallas(x, L, weight, bias)
    out = jax.block_until_ready(out)

    ref = cheb_conv_reference(x, L, weight, bias)
    assert out.shape == (B, N, C_out)
    assert jnp.allclose(out, ref, atol=2e-4, rtol=2e-4), "mismatch vs reference"

    print("KERNEL_OK")
</pallas_src>

<mosaic_0001>
module attributes {stable_mosaic.version = 11 : i64} {
  func.func @_cheb_kernel(%arg0: i32, %arg1: memref<16x128xf32, #tpu.memory_space<vmem>>, %arg2: memref<128x128xf32, #tpu.memory_space<vmem>>, %arg3: memref<3x8x8xf32, #tpu.memory_space<vmem>>, %arg4: memref<8x1xf32, #tpu.memory_space<vmem>>, %arg5: memref<2x8x128xf32, #tpu.memory_space<vmem>>) attributes {dimension_semantics = [#tpu.dimension_semantics<parallel>], iteration_bounds = array<i64: 1>, scalar_prefetch = 0 : i64, scratch_operands = 0 : i64, tpu.core_type = #tpu.core_type<tc>, window_params = [{transform_indices = @transform_0, window_bounds = array<i64: 16, 128>}, {pipeline_mode = #tpu.pipeline_mode<synchronous>, transform_indices = @transform_1, window_bounds = array<i64: 128, 128>}, {pipeline_mode = #tpu.pipeline_mode<synchronous>, transform_indices = @transform_2, window_bounds = array<i64: 3, 8, 8>}, {pipeline_mode = #tpu.pipeline_mode<synchronous>, transform_indices = @transform_3, window_bounds = array<i64: 8, 1>}, {transform_indices = @transform_4, window_bounds = array<i64: 2, 8, 128>}]} {
    %c0 = arith.constant 0 : index
    %c0_0 = arith.constant 0 : index
    %0 = vector.load %arg1[%c0, %c0_0] : memref<16x128xf32, #tpu.memory_space<vmem>>, vector<16x128xf32>
    %1 = vector.shape_cast %0 : vector<16x128xf32> to vector<2x8x128xf32>
    %c0_1 = arith.constant 0 : index
    %c0_2 = arith.constant 0 : index
    %c0_3 = arith.constant 0 : index
    %2 = vector.load %arg3[%c0_1, %c0_2, %c0_3] : memref<3x8x8xf32, #tpu.memory_space<vmem>>, vector<1x8x8xf32>
    %3 = vector.shape_cast %2 : vector<1x8x8xf32> to vector<8x8xf32>
    "tpu.trace_start"() <{level = 10 : i32, message = "oc,bcn->bon"}> : () -> ()
    %cst = arith.constant dense<0.000000e+00> : vector<2x128x8xf32>
    %4 = tpu.matmul %1, %3, %cst {dimension_numbers = #tpu.dot_dimension_numbers<[1], [1], [0, 2], [0], [0, 0, 0, 2, 1, 0], [], []>} : vector<2x8x128xf32>, vector<8x8xf32>, vector<2x128x8xf32> -> vector<2x128x8xf32>
    %5 = tpu.transpose %4, [0, 2, 1] : vector<2x128x8xf32> -> vector<2x8x128xf32>
    "tpu.trace_stop"() : () -> ()
    %c0_4 = arith.constant 0 : index
    %c0_5 = arith.constant 0 : index
    %6 = vector.load %arg2[%c0_4, %c0_5] : memref<128x128xf32, #tpu.memory_space<vmem>>, vector<128x128xf32>
    %cst_6 = arith.constant dense<0.000000e+00> : vector<16x128xf32>
    %7 = tpu.matmul %0, %6, %cst_6 {dimension_numbers = #tpu.dot_dimension_numbers<[1], [0], [0], [1], [0, 0, 1, 1], [], []>} : vector<16x128xf32>, vector<128x128xf32>, vector<16x128xf32> -> vector<16x128xf32>
    %8 = vector.shape_cast %7 : vector<16x128xf32> to vector<2x8x128xf32>
    %c1 = arith.constant 1 : index
    %c0_7 = arith.constant 0 : index
    %c0_8 = arith.constant 0 : index
    %9 = vector.load %arg3[%c1, %c0_7, %c0_8] : memref<3x8x8xf32, #tpu.memory_space<vmem>>, vector<1x8x8xf32>
    %10 = vector.shape_cast %9 : vector<1x8x8xf32> to vector<8x8xf32>
    "tpu.trace_start"() <{level = 10 : i32, message = "oc,bcn->bon"}> : () -> ()
    %cst_9 = arith.constant dense<0.000000e+00> : vector<2x128x8xf32>
    %11 = tpu.matmul %8, %10, %cst_9 {dimension_numbers = #tpu.dot_dimension_numbers<[1], [1], [0, 2], [0], [0, 0, 0, 2, 1, 0], [], []>} : vector<2x8x128xf32>, vector<8x8xf32>, vector<2x128x8xf32> -> vector<2x128x8xf32>
    %12 = tpu.transpose %11, [0, 2, 1] : vector<2x128x8xf32> -> vector<2x8x128xf32>
    "tpu.trace_stop"() : () -> ()
    %13 = arith.addf %5, %12 : vector<2x8x128xf32>
    %cst_10 = arith.constant dense<0.000000e+00> : vector<16x128xf32>
    %14 = tpu.matmul %7, %6, %cst_10 {dimension_numbers = #tpu.dot_dimension_numbers<[1], [0], [0], [1], [0, 0, 1, 1], [], []>} : vector<16x128xf32>, vector<128x128xf32>, vector<16x128xf32> -> vector<16x128xf32>
    %cst_11 = arith.constant 2.000000e+00 : f32
    %15 = vector.broadcast %cst_11 : f32 to vector<16x128xf32>
    %16 = arith.mulf %15, %14 : vector<16x128xf32>
    %17 = arith.subf %16, %0 : vector<16x128xf32>
    %18 = vector.shape_cast %17 : vector<16x128xf32> to vector<2x8x128xf32>
    %c2 = arith.constant 2 : index
    %c0_12 = arith.constant 0 : index
    %c0_13 = arith.constant 0 : index
    %19 = vector.load %arg3[%c2, %c0_12, %c0_13] : memref<3x8x8xf32, #tpu.memory_space<vmem>>, vector<1x8x8xf32>
    %20 = vector.shape_cast %19 : vector<1x8x8xf32> to vector<8x8xf32>
    "tpu.trace_start"() <{level = 10 : i32, message = "oc,bcn->bon"}> : () -> ()
    %cst_14 = arith.constant dense<0.000000e+00> : vector<2x128x8xf32>
    %21 = tpu.matmul %18, %20, %cst_14 {dimension_numbers = #tpu.dot_dimension_numbers<[1], [1], [0, 2], [0], [0, 0, 0, 2, 1, 0], [], []>} : vector<2x8x128xf32>, vector<8x8xf32>, vector<2x128x8xf32> -> vector<2x128x8xf32>
    %22 = tpu.transpose %21, [0, 2, 1] : vector<2x128x8xf32> -> vector<2x8x128xf32>
    "tpu.trace_stop"() : () -> ()
    %23 = arith.addf %13, %22 : vector<2x8x128xf32>
    %c0_15 = arith.constant 0 : index
    %c0_16 = arith.constant 0 : index
    %24 = vector.load %arg4[%c0_15, %c0_16] : memref<8x1xf32, #tpu.memory_space<vmem>>, vector<8x1xf32>
    %25 = vector.shape_cast %24 : vector<8x1xf32> to vector<1x8x1xf32>
    %26 = vector.broadcast %25 : vector<1x8x1xf32> to vector<2x8x128xf32>
    %27 = arith.addf %23, %26 : vector<2x8x128xf32>
    %c0_17 = arith.constant 0 : index
    %c0_18 = arith.constant 0 : index
    %c0_19 = arith.constant 0 : index
    %28 = vector.load %arg5[%c0_17, %c0_18, %c0_19] : memref<2x8x128xf32, #tpu.memory_space<vmem>>, vector<2x8x128xf32>
    tpu.vector_store %arg5[%c0_17, %c0_18, %c0_19], %27 {strides = array<i32>} : memref<2x8x128xf32, #tpu.memory_space<vmem>>, vector<2x8x128xf32>,
    return
  }
  func.func @transform_0(%arg0: i32) -> (i32, i32) {
    %c0_i32 = arith.constant 0 : i32
    %c0_i32_0 = arith.constant 0 : i32
    return %arg0, %c0_i32 : i32, i32
  }
  func.func @transform_1(%arg0: i32) -> (i32, i32) {
    %c0_i32 = arith.constant 0 : i32
    %c0_i32_0 = arith.constant 0 : i32
    %c0_i32_1 = arith.constant 0 : i32
    return %c0_i32, %c0_i32_0 : i32, i32
  }
  func.func @transform_2(%arg0: i32) -> (i32, i32, i32) {
    %c0_i32 = arith.constant 0 : i32
    %c0_i32_0 = arith.constant 0 : i32
    %c0_i32_1 = arith.constant 0 : i32
    %c0_i32_2 = arith.constant 0 : i32
    return %c0_i32, %c0_i32_0, %c0_i32_1 : i32, i32, i32
  }
  func.func @transform_3(%arg0: i32) -> (i32, i32) {
    %c0_i32 = arith.constant 0 : i32
    %c0_i32_0 = arith.constant 0 : i32
    %c0_i32_1 = arith.constant 0 : i32
    return %c0_i32, %c0_i32_0 : i32, i32
  }
  func.func @transform_4(%arg0: i32) -> (i32, i32, i32) {
    %c0_i32 = arith.constant 0 : i32
    %c0_i32_0 = arith.constant 0 : i32
    %c0_i32_1 = arith.constant 0 : i32
    return %arg0, %c0_i32, %c0_i32_0 : i32, i32, i32
  }
}

</mosaic_0001>

<bundles_post_ra>
// kernel: tpu_custom_call.1
= control target key start
LH: loop header
LB: loop body
LE: loop exit
PB: predicated region body
PF: predicated region fallthrough
CT: control target
= control target key end

     0   :  { %9 = vsyncpa [#allocation3], 0  ;;  %s2547_s0 = inlined_call_operand.hbm [shape: f32[16,128], index: 0, kind: input, shape index: {}]   ;;  %s2548_s1 = inlined_call_operand.hbm [shape: f32[128,128], index: 1, kind: input, shape index: {}]   ;;  %s2549_s2 = inlined_call_operand.hbm [shape: f32[3,8,8], index: 2, kind: input, shape index: {}]   ;;  %s2550_s3 = inlined_call_operand.vmem [shape: f32[8,1], index: 3, kind: input, shape index: {}]   ;;  %s2551_s4 = inlined_call_operand.hbm [shape: f32[2,8,128], index: 4, kind: output, shape index: {}]  }
   0x1   :  { %10 = vsyncpa [#allocation6], 0 }
   0x2   :  { %11 = vsyncpa [#allocation4], 0  ;;  %s2177_s15 = smov [#allocation5]   ;;  %s2178_s17 = smov [#allocation2]  }
   0x3   :  { %s29_s16 = sshll.u32 %s2177_s15, 4  ;;  %s17_s18 = sshll.u32 %s2178_s17, 4  ;;  %s30_s16 = int_to_ptr.vmem [resolvable:$true] %s29_s16  ;;  %s18_s18 = int_to_ptr.vmem [resolvable:$true] %s17_s18 }
   0x4   :  { %s2099_s19 = scalar_lea.vmem %s30_s16, 2048  ;;  %p2104_p1 = scmp.lt.s32.totalorder %s30_s16, %s30_s16 }
   0x5   :  { %p2100_p0 = scmp.ne.s32.totalorder %s30_s16, %s2099_s19  ;;  %p2105_p2 = scmp.lt.s32.totalorder %s2099_s19, %s2099_s19 }
   0x7   :  { %p2106_p3 = por %p2105_p2, %p2104_p1 }
   0x9   :  { %p2107_p4 = pnand %p2106_p3, %p2100_p0 }
   0xb   :  { %2110 = shalt.err (!%p2107_p4)
}
   0xc   :  { %s2179_s20 = smov 128   ;;  %s2180_s21 = smov 8  }
   0xd   :  { %35 = dma.hbm_to_vmem [thread:$0]  %s2548_s1, 2048, %s30_s16, [#allocation6], %s2179_s20, %s2179_s20, %s2180_s21  }
   0xe   :  { %s2119_s24 = scalar_lea.vmem %s18_s18, 256  ;;  %p2124_p6 = scmp.lt.s32.totalorder %s18_s18, %s18_s18 }
   0xf   :  { %p2120_p5 = scmp.ne.s32.totalorder %s18_s18, %s2119_s24  ;;  %p2125_p7 = scmp.lt.s32.totalorder %s2119_s24, %s2119_s24 }
  0x11   :  { %p2126_p8 = por %p2125_p7, %p2124_p6 }
  0x13   :  { %p2127_p9 = pnand %p2126_p8, %p2120_p5 }
  0x15   :  { %2130 = shalt.err (!%p2127_p9)
}
  0x16   :  { %23 = dma.hbm_to_vmem [thread:$0]  %s2547_s0, 256, %s18_s18, [#allocation3], %s2179_s20, %s2179_s20, %s2180_s21  }
  0x17   :  { %s2181_s27 = smov [#allocation7]  }
  0x18   :  { %s41_s28 = sshll.u32 %s2181_s27, 4  ;;  %s42_s28 = int_to_ptr.vmem [resolvable:$true] %s41_s28 }
  0x19   :  { %s2139_s29 = scalar_lea.vmem %s42_s28, 384  ;;  %p2144_p11 = scmp.lt.s32.totalorder %s42_s28, %s42_s28 }
  0x1a   :  { %p2140_p10 = scmp.ne.s32.totalorder %s42_s28, %s2139_s29  ;;  %p2145_p12 = scmp.lt.s32.totalorder %s2139_s29, %s2139_s29 }
  0x1c   :  { %p2146_p13 = por %p2145_p12, %p2144_p11 }
  0x1e   :  { %p2147_p0 = pnand %p2146_p13, %p2140_p10 }
  0x20   :  { %2150 = shalt.err (!%p2147_p0)
}
  0x21   :  { %47 = dma.hbm_to_vmem [thread:$0]  %s2549_s2, 384, %s42_s28, [#allocation6], %s2179_s20, %s2179_s20, %s2180_s21  }
  0x22   :  { %2171 = dma.done.wait [#allocation3], 256  }
  0x23   :  { %2172 = vsyncadd [#allocation3], 4294967040 }
  0x24   :  { %2173 = dma.done.wait [#allocation6], 2432  }
  0x25   :  { %2174 = vsyncadd [#allocation6], 4294964864  ;;  %vm126_vm0 = vcmask 64512   ;;  %v2227_v0 = vld [vmem:[#allocation2 + $0x8] sm:$0xff]  ;;  %v61_v1 = vld [vmem:[#allocation7] sm:$0xff] }
  0x26   :  { %94 = vxpose.xlu0.b32.start.end [1/1] (short) %v2227_v0, 128  ;;  %2079 = vmatprep.subr.msk.mxu1 %vm126_vm0, %v61_v1  ;;  %v2234_v2 = vld [vmem:[#allocation5 + $0x78] sm:$0xff]  ;;  %v2238_v3 = vld [vmem:[#allocation2] sm:$0xff]  ;;  %v2246_v7 = vld [vmem:[#allocation5 + $0x68] sm:$0xff] }
  0x27   :  { %2080 = vmatpush3.xpose.msk.msra.mxu1 %vm126_vm0, %v61_v1  ;;  %1859 = vmatprep.subr.msk.mxu0 %vm126_vm0, %v61_v1  ;;  %v2242_v6 = vld [vmem:[#allocation5 + $0x70] sm:$0xff]  ;;  %v2250_v9 = vld [vmem:[#allocation5 + $0x60] sm:$0xff]  ;;  %v2255_v10 = vld [vmem:[#allocation5 + $0x58] sm:$0xff] }
  0x28   :  { %1860 = vmatpush3.xpose.msk.msra.mxu0 %vm126_vm0, %v61_v1  ;;  %1909 = vmatprep.subr.mxu1 %v2234_v2  ;;  %v2259_v12 = vld [vmem:[#allocation5 + $0x50] sm:$0xff]  ;;  %v2264_v13 = vld [vmem:[#allocation5 + $0x48] sm:$0xff]  ;;  %v2268_v15 = vld [vmem:[#allocation5 + $0x40] sm:$0xff] }
  0x29   :  { %1994 = vmatprep.subr.mxu0 %v2234_v2  ;;  %v2273_v16 = vld [vmem:[#allocation5 + $0x38] sm:$0xff]  ;;  %v2277_v18 = vld [vmem:[#allocation5 + $0x30] sm:$0xff]  ;;  %v2282_v19 = vld [vmem:[#allocation5 + $0x28] sm:$0xff] }
  0x2a   :  { %v2286_v21 = vld [vmem:[#allocation5 + $0x20] sm:$0xff]  ;;  %v2291_v22 = vld [vmem:[#allocation5 + $0x18] sm:$0xff]  ;;  %v2295_v24 = vld [vmem:[#allocation5 + $0x10] sm:$0xff] }
  0x2b   :  { %v2300_v25 = vld [vmem:[#allocation5 + $0x8] sm:$0xff]  ;;  %v2304_v27 = vld [vmem:[#allocation5] sm:$0xff] }
  0x63   :  { %62 = vxpose.xlu0.b32.start.end [1/1] (short) %v2238_v3, 128 }
  0xa2   :  { %v110_v4 = vpop.trf.xlu0 }
  0xa3   :  { %1885 = vmatprep.mubr.msk.f32.mxu1 %vm126_vm0, %v110_v4 }
  0xa6   :  { %v111_v5 = vpop.trf.xlu0 }
  0xa7   :  { %1886 = vmatmul.mubr.msk.f32.vlgmr.msra.gmra.mxu1 %vm126_vm0, %v111_v5 }
  0xa8   :  { %1910 = vmatpush3.msra.mxu1 %v2234_v2 }
  0xa9   :  { %1911 = vmatprep.subr.mxu1 %v2242_v6 }
  0xaa   :  { %v112_v8 = vpop.trf.xlu0  ;;  %1912 = vmatpush3.msra.mxu1 %v2242_v6 }
  0xab   :  { %1888 = vmatprep.mubr.msk.f32.mxu1 %vm126_vm0, %v112_v8  ;;  %1913 = vmatprep.subr.mxu1 %v2246_v7 }
  0xac   :  { %1914 = vmatpush3.msra.mxu1 %v2246_v7 }
  0xad   :  { %1915 = vmatprep.subr.mxu1 %v2250_v9 }
  0xae   :  { %v113_v11 = vpop.trf.xlu0  ;;  %1916 = vmatpush3.msra.mxu1 %v2250_v9 }
  0xaf   :  { %1889 = vmatmul.mubr.msk.f32.gmra.mxu1 %vm126_vm0, %v113_v11  ;;  %1917 = vmatprep.subr.mxu1 %v2255_v10 }
  0xb0   :  { %1918 = vmatpush3.msra.mxu1 %v2255_v10 }
  0xb1   :  { %1919 = vmatprep.subr.mxu1 %v2259_v12 }
  0xb2   :  { %v114_v14 = vpop.trf.xlu0  ;;  %1920 = vmatpush3.msra.mxu1 %v2259_v12 }
  0xb3   :  { %1891 = vmatprep.mubr.msk.f32.mxu1 %vm126_vm0, %v114_v14  ;;  %1921 = vmatprep.subr.mxu1 %v2264_v13 }
  0xb4   :  { %1922 = vmatpush3.msra.mxu1 %v2264_v13 }
  0xb5   :  { %1923 = vmatprep.subr.mxu1 %v2268_v15 }
  0xb6   :  { %v115_v17 = vpop.trf.xlu0  ;;  %1924 = vmatpush3.msra.mxu1 %v2268_v15 }
  0xb7   :  { %1892 = vmatmul.mubr.msk.f32.gmra.mxu1 %vm126_vm0, %v115_v17  ;;  %1925 = vmatprep.subr.mxu1 %v2273_v16 }
  0xb8   :  { %1926 = vmatpush3.msra.mxu1 %v2273_v16 }
  0xb9   :  { %1927 = vmatprep.subr.mxu1 %v2277_v18 }
  0xba   :  { %v116_v20 = vpop.trf.xlu0  ;;  %1928 = vmatpush3.msra.mxu1 %v2277_v18 }
  0xbb   :  { %1894 = vmatprep.mubr.msk.f32.mxu1 %vm126_vm0, %v116_v20  ;;  %1929 = vmatprep.subr.mxu1 %v2282_v19 }
  0xbc   :  { %1930 = vmatpush3.msra.mxu1 %v2282_v19 }
  0xbd   :  { %1931 = vmatprep.subr.mxu1 %v2286_v21 }
  0xbe   :  { %v117_v23 = vpop.trf.xlu0  ;;  %1932 = vmatpush3.msra.mxu1 %v2286_v21 }
  0xbf   :  { %1895 = vmatmul.mubr.msk.f32.gmra.mxu1 %vm126_vm0, %v117_v23  ;;  %1933 = vmatprep.subr.mxu1 %v2291_v22  ;;  %v607_v23 = vld [vmem:[#allocation7 + $0x8] sm:$0xff] }
  0xc0   :  { %1934 = vmatpush3.msra.mxu1 %v2291_v22 }
  0xc1   :  { %1935 = vmatprep.subr.mxu1 %v2295_v24 }
  0xc2   :  { %v118_v26 = vpop.trf.xlu0  ;;  %1936 = vmatpush3.msra.mxu1 %v2295_v24 }
  0xc3   :  { %1897 = vmatprep.mubr.msk.f32.mxu1 %vm126_vm0, %v118_v26  ;;  %1937 = vmatprep.subr.mxu1 %v2300_v25  ;;  %v2182_v26 = vmov 0  }
  0xc4   :  { %1938 = vmatpush3.msra.mxu1 %v2300_v25 }
  0xc5   :  { %1939 = vmatprep.subr.mxu1 %v2304_v27 }
  0xc6   :  { %v119_v28 = vpop.trf.xlu0  ;;  %1940 = vmatpush3.msra.mxu1 %v2304_v27 }
  0xc7   :  { %1898 = vmatmul.mubr.msk.f32.gmra.mxu1 %vm126_vm0, %v119_v28  ;;  %1944 = vmatprep.subr.msk.mxu1 %vm126_vm0, %v607_v23 }
  0xca   :  { %v120_v29 = vpop.trf.xlu0 }
  0xcb   :  { %1900 = vmatprep.mubr.msk.f32.mxu1 %vm126_vm0, %v120_v29 }
  0xce   :  { %v121_v30 = vpop.trf.xlu0 }
  0xcf   :  { %1901 = vmatmul.mubr.msk.f32.gmra.mxu1 %vm126_vm0, %v121_v30 }
  0xd2   :  { %v122_v31 = vpop.trf.xlu0 }
  0xd3   :  { %1903 = vmatprep.mubr.msk.f32.mxu1 %vm126_vm0, %v122_v31 }
  0xd6   :  { %v123_v32 = vpop.trf.xlu0 }
  0xd7   :  { %1904 = vmatmul.mubr.msk.f32.gmra.mxu1 %vm126_vm0, %v123_v32 }
  0xda   :  { %v124_v33 = vpop.trf.xlu0 }
  0xdb   :  { %1906 = vmatprep.mubr.msk.f32.mxu1 %vm126_vm0, %v124_v33 }
  0xde   :  { %v125_v34 = vpop.trf.xlu0 }
  0xdf   :  { %1907 = vmatmul.mubr.msk.f32.gmra.mxu1 %vm126_vm0, %v125_v34 }
  0xe0   :  { %1941 = vmatprep.mubr.f32.mxu1 %v2238_v3 }
  0xe2   :  { %v78_v35 = vpop.trf.xlu0 }
  0xe3   :  { %1942 = vmatmul.mubr.f32.vlgmr.msra.gmra.mxu1 %v2227_v0  ;;  %1861 = vmatprep.mubr.msk.f32.mxu0 %vm126_vm0, %v78_v35 }
  0xe4   :  { %1945 = vmatpush3.xpose.msk.msra.mxu1 %vm126_vm0, %v607_v23 }
  0xe6   :  { %v79_v36 = vpop.trf.xlu0 }
  0xe7   :  { %1862 = vmatmul.mubr.msk.f32.vlgmr.msra.gmra.mxu0 %vm126_vm0, %v79_v36 }
  0xe8   :  { %1995 = vmatpush3.msra.mxu0 %v2234_v2 }
  0xe9   :  { %1996 = vmatprep.subr.mxu0 %v2242_v6 }
  0xea   :  { %v80_v37 = vpop.trf.xlu0  ;;  %1997 = vmatpush3.msra.mxu0 %v2242_v6 }
  0xeb   :  { %1864 = vmatprep.mubr.msk.f32.mxu0 %vm126_vm0, %v80_v37  ;;  %1998 = vmatprep.subr.mxu0 %v2246_v7  ;;  %v1142_v37 = vld [vmem:[#allocation7 + $0x10] sm:$0xff] }
  0xec   :  { %1999 = vmatpush3.msra.mxu0 %v2246_v7 }
  0xed   :  { %2000 = vmatprep.subr.mxu0 %v2250_v9 }
  0xee   :  { %v81_v38 = vpop.trf.xlu0  ;;  %2001 = vmatpush3.msra.mxu0 %v2250_v9 }
  0xef   :  { %1865 = vmatmul.mubr.msk.f32.gmra.mxu0 %vm126_vm0, %v81_v38  ;;  %2002 = vmatprep.subr.mxu0 %v2255_v10 }
  0xf0   :  { %2003 = vmatpush3.msra.mxu0 %v2255_v10 }
  0xf1   :  { %2004 = vmatprep.subr.mxu0 %v2259_v12 }
  0xf2   :  { %v82_v39 = vpop.trf.xlu0  ;;  %2005 = vmatpush3.msra.mxu0 %v2259_v12 }
  0xf3   :  { %1867 = vmatprep.mubr.msk.f32.mxu0 %vm126_vm0, %v82_v39  ;;  %2006 = vmatprep.subr.mxu0 %v2264_v13 }
  0xf4   :  { %2007 = vmatpush3.msra.mxu0 %v2264_v13 }
  0xf5   :  { %2008 = vmatprep.subr.mxu0 %v2268_v15 }
  0xf6   :  { %v83_v40 = vpop.trf.xlu0  ;;  %2009 = vmatpush3.msra.mxu0 %v2268_v15 }
  0xf7   :  { %1868 = vmatmul.mubr.msk.f32.gmra.mxu0 %vm126_vm0, %v83_v40  ;;  %2010 = vmatprep.subr.mxu0 %v2273_v16 }
  0xf8   :  { %2011 = vmatpush3.msra.mxu0 %v2273_v16 }
  0xf9   :  { %2012 = vmatprep.subr.mxu0 %v2277_v18 }
  0xfa   :  { %v84_v41 = vpop.trf.xlu0  ;;  %2013 = vmatpush3.msra.mxu0 %v2277_v18 }
  0xfb   :  { %1870 = vmatprep.mubr.msk.f32.mxu0 %vm126_vm0, %v84_v41  ;;  %2014 = vmatprep.subr.mxu0 %v2282_v19  ;;  %v1597_v41 = vld [vmem:[%s2550_s3] sm:$0xff]  ;;  %s2183_s3 = smov [#allocation8]  }
  0xfc   :  { %2015 = vmatpush3.msra.mxu0 %v2282_v19  ;;  %s1612_s5 = sshll.u32 %s2183_s3, 4  ;;  %s1613_s5 = int_to_ptr.vmem [resolvable:$true] %s1612_s5 }
  0xfd   :  { %2016 = vmatprep.subr.mxu0 %v2286_v21  ;;  %s2151_s6 = scalar_lea.vmem %s1613_s5, 256  ;;  %p2156_p2 = scmp.lt.s32.totalorder %s1613_s5, %s1613_s5 }
  0xfe   :  { %v85_v42 = vpop.trf.xlu0  ;;  %2017 = vmatpush3.msra.mxu0 %v2286_v21  ;;  %p2152_p1 = scmp.ne.s32.totalorder %s1613_s5, %s2151_s6  ;;  %p2157_p3 = scmp.lt.s32.totalorder %s2151_s6, %s2151_s6 }
  0xff   :  { %1871 = vmatmul.mubr.msk.f32.gmra.mxu0 %vm126_vm0, %v85_v42  ;;  %2018 = vmatprep.subr.mxu0 %v2291_v22 }
 0x100   :  { %2019 = vmatpush3.msra.mxu0 %v2291_v22  ;;  %p2158_p4 = por %p2157_p3, %p2156_p2 }
 0x101   :  { %2020 = vmatprep.subr.mxu0 %v2295_v24 }
 0x102   :  { %v86_v43 = vpop.trf.xlu0  ;;  %2021 = vmatpush3.msra.mxu0 %v2295_v24  ;;  %p2159_p5 = pnand %p2158_p4, %p2152_p1 }
 0x103   :  { %1873 = vmatprep.mubr.msk.f32.mxu0 %vm126_vm0, %v86_v43  ;;  %2022 = vmatprep.subr.mxu0 %v2300_v25 }
 0x104   :  { %2023 = vmatpush3.msra.mxu0 %v2300_v25 }
 0x105   :  { %2024 = vmatprep.subr.mxu0 %v2304_v27 }
 0x106   :  { %v87_v44 = vpop.trf.xlu0  ;;  %2025 = vmatpush3.msra.mxu0 %v2304_v27 }
 0x107   :  { %1874 = vmatmul.mubr.msk.f32.gmra.mxu0 %vm126_vm0, %v87_v44  ;;  %2029 = vmatprep.subr.msk.mxu0 %vm126_vm0, %v1142_v37 }
 0x10a   :  { %v88_v45 = vpop.trf.xlu0 }
 0x10b   :  { %1876 = vmatprep.mubr.msk.f32.mxu0 %vm126_vm0, %v88_v45 }
 0x10e   :  { %v89_v46 = vpop.trf.xlu0 }
 0x10f   :  { %1877 = vmatmul.mubr.msk.f32.gmra.mxu0 %vm126_vm0, %v89_v46 }
 0x112   :  { %v90_v47 = vpop.trf.xlu0 }
 0x113   :  { %1879 = vmatprep.mubr.msk.f32.mxu0 %vm126_vm0, %v90_v47 }
 0x116   :  { %v91_v48 = vpop.trf.xlu0 }
 0x117   :  { %1880 = vmatmul.mubr.msk.f32.gmra.mxu0 %vm126_vm0, %v91_v48 }
 0x11a   :  { %v92_v49 = vpop.trf.xlu0 }
 0x11b   :  { %1882 = vmatprep.mubr.msk.f32.mxu0 %vm126_vm0, %v92_v49 }
 0x11e   :  { %v93_v50 = vpop.trf.xlu0 }
 0x11f   :  { %1883 = vmatmul.mubr.msk.f32.gmra.mxu0 %vm126_vm0, %v93_v50 }
 0x167   :  { %v2367_v51 = vpop.f32.mrf.mxu1 }
 0x169   :  { %v2369_v52 = vpop.f32.mrf.mxu1 }
 0x16f   :  { %v2371_v53 = vpop.f32.mrf.mxu1 }
 0x171   :  { %v2373_v54 = vpop.f32.mrf.mxu1 }
 0x177   :  { %v2375_v55 = vpop.f32.mrf.mxu1 }
 0x179   :  { %v2377_v56 = vpop.f32.mrf.mxu1 }
 0x17f   :  { %v2379_v57 = vpop.f32.mrf.mxu1 }
 0x181   :  { %v2381_v58 = vpop.f32.mrf.mxu1 }
 0x187   :  { %v2383_v59 = vpop.f32.mrf.mxu1 }
 0x189   :  { %v2385_v60 = vpop.f32.mrf.mxu1 }
 0x18f   :  { %v2387_v61 = vpop.f32.mrf.mxu1 }
 0x191   :  { %v2389_v62 = vpop.f32.mrf.mxu1 }
 0x197   :  { %v2391_v63 = vpop.f32.mrf.mxu1 }
 0x199   :  { %v2393_v1 = vpop.f32.mrf.mxu1 }
 0x19f   :  { %v2395_v2 = vpop.f32.mrf.mxu1 }
 0x1a1   :  { %v2397_v4 = vpop.f32.mrf.mxu1 }
 0x1a3   :  { %v1943_v5 = vpop.f32.mrf.mxu1 }
 0x1a4   :  { %640 = vxpose.xlu1.b32.start.end [1/1] (short) %v1943_v5, 128 }
 0x1a5   :  { %v597_v6 = vpop.f32.mrf.mxu1 }
 0x1a6   :  { %2026 = vmatprep.mubr.f32.mxu0 %v597_v6 }
 0x1a7   :  { %2027 = vmatmul.mubr.f32.vlgmr.msra.gmra.mxu0 %v1943_v5  ;;  %v1863_v7 = vpop.f32.mrf.mxu0 }
 0x1a8   :  { %2030 = vmatpush3.xpose.msk.msra.mxu0 %vm126_vm0, %v1142_v37 }
 0x1a9   :  { %v292_v8 = vpop.f32.mrf.mxu0 }
 0x1af   :  { %v1866_v9 = vpop.f32.mrf.mxu0 }
 0x1b1   :  { %v302_v10 = vpop.f32.mrf.mxu0 }
 0x1b7   :  { %v1869_v11 = vpop.f32.mrf.mxu0 }
 0x1b9   :  { %v312_v12 = vpop.f32.mrf.mxu0 }
 0x1bf   :  { %v1872_v13 = vpop.f32.mrf.mxu0 }
 0x1c1   :  { %v322_v14 = vpop.f32.mrf.mxu0 }
 0x1c7   :  { %v1875_v15 = vpop.f32.mrf.mxu0 }
 0x1c9   :  { %v332_v16 = vpop.f32.mrf.mxu0 }
 0x1cf   :  { %v1878_v17 = vpop.f32.mrf.mxu0 }
 0x1d1   :  { %v342_v18 = vpop.f32.mrf.mxu0 }
 0x1d7   :  { %v1881_v19 = vpop.f32.mrf.mxu0 }
 0x1d9   :  { %v352_v20 = vpop.f32.mrf.mxu0 }
 0x1df   :  { %v1884_v21 = vpop.f32.mrf.mxu0 }
 0x1e1   :  { %451 = vxpose.xlu1.b32.start [1/16] (narrow) %v292_v8, 8  ;;  %v362_v22 = vpop.f32.mrf.mxu0 }
 0x1e5   :  { %452 = vxpose.xlu1.b32.cont [2/16] (narrow) %v1863_v7, 8 }
 0x1e9   :  { %453 = vxpose.xlu1.b32.cont [3/16] (narrow) %v302_v10, 8 }
 0x1ed   :  { %454 = vxpose.xlu1.b32.cont [4/16] (narrow) %v1866_v9, 8 }
 0x1f1   :  { %455 = vxpose.xlu1.b32.cont [5/16] (narrow) %v312_v12, 8 }
 0x1f5   :  { %456 = vxpose.xlu1.b32.cont [6/16] (narrow) %v1869_v11, 8 }
 0x1f9   :  { %457 = vxpose.xlu1.b32.cont [7/16] (narrow) %v322_v14, 8 }
 0x1fd   :  { %458 = vxpose.xlu1.b32.cont [8/16] (narrow) %v1872_v13, 8 }
 0x201   :  { %459 = vxpose.xlu1.b32.cont [9/16] (narrow) %v332_v16, 8 }
 0x205   :  { %460 = vxpose.xlu1.b32.cont [10/16] (narrow) %v1875_v15, 8 }
 0x209   :  { %461 = vxpose.xlu1.b32.cont [11/16] (narrow) %v342_v18, 8 }
 0x20d   :  { %462 = vxpose.xlu1.b32.cont [12/16] (narrow) %v1878_v17, 8 }
 0x211   :  { %463 = vxpose.xlu1.b32.cont [13/16] (narrow) %v352_v20, 8 }
 0x215   :  { %464 = vxpose.xlu1.b32.cont [14/16] (narrow) %v1881_v19, 8 }
 0x219   :  { %465 = vxpose.xlu1.b32.cont [15/16] (narrow) %v362_v22, 8 }
 0x21d   :  { %466 = vxpose.xlu1.b32.end [16/16] (narrow) %v1884_v21, 8 }
 0x220   :  { %v2401_v24 = vpop.trf.xlu1 }
 0x221   :  { %608 = vxpose.xlu1.b32.start.end [1/1] (short) %v597_v6, 128 }
 0x224   :  { %v2403_v25 = vpop.trf.xlu1 }
 0x228   :  { %v2406_v27 = vpop.trf.xlu1 }
 0x22c   :  { %v2408_v28 = vpop.trf.xlu1 }
 0x230   :  { %v2410_v29 = vpop.trf.xlu1 }
 0x234   :  { %v2412_v30 = vpop.trf.xlu1 }
 0x238   :  { %v2414_v31 = vpop.trf.xlu1 }
 0x23c   :  { %v2416_v32 = vpop.trf.xlu1 }
 0x23f   :  { %2089 = vset.pattern.permute.xlu1 %v2182_v26 }
 0x240   :  { %v2418_v34 = vpop.trf.xlu1 }
 0x244   :  { %v2423_v39 = vpop.trf.xlu1 }
 0x248   :  { %v2425_v40 = vpop.trf.xlu1 }
 0x24c   :  { %v2430_v42 = vpop.trf.xlu1 }
 0x250   :  { %v2432_v43 = vpop.trf.xlu1 }
 0x254   :  { %v2434_v44 = vpop.trf.xlu1 }
 0x258   :  { %v2436_v45 = vpop.trf.xlu1 }
 0x267   :  { %v2028_v33 = vpop.f32.mrf.mxu0 }
 0x268   :  { %v1138_v49 = vmul.f32 2.0, %v2028_v33 }
 0x269   :  { %v1128_v35 = vpop.f32.mrf.mxu0 }
 0x26a   :  { %v1137_v36 = vmul.f32 2.0, %v1128_v35  ;;  %v1140_v5 = vsub.f32 %v1138_v49, %v2227_v0 }
 0x26c   :  { %v1139_v38 = vsub.f32 %v1137_v36, %v2238_v3  ;;  %v2438_v3 = vpop.trf.xlu1 }
 0x26e   :  { %1143 = vxpose.xlu0.b32.start.end [1/1] (short) %v1139_v38, 128 }
 0x270   :  { %v2440_v46 = vpop.trf.xlu1 }
 0x27b   :  { %1600 = vperm.xlu1 %2089, %v1597_v41  }
 0x29d   :  { %v624_v47 = vpop.trf.xlu1 }
 0x29e   :  { %1946 = vmatprep.mubr.msk.f32.mxu1 %vm126_vm0, %v624_v47 }
 0x2a1   :  { %v625_v48 = vpop.trf.xlu1 }
 0x2a2   :  { %1947 = vmatmul.mubr.msk.f32.vlgmr.msra.gmra.mxu1 %vm126_vm0, %v625_v48 }
 0x2a4   :  { %483 = vxpose.xlu1.b32.start [1/16] (narrow) %v2369_v52, 8 }
 0x2a5   :  { %v626_v50 = vpop.trf.xlu1 }
 0x2a6   :  { %1949 = vmatprep.mubr.msk.f32.mxu1 %vm126_vm0, %v626_v50 }
 0x2a8   :  { %484 = vxpose.xlu1.b32.cont [2/16] (narrow) %v2367_v51, 8 }
 0x2a9   :  { %v627_v6 = vpop.trf.xlu1 }
 0x2aa   :  { %1950 = vmatmul.mubr.msk.f32.gmra.mxu1 %vm126_vm0, %v627_v6 }
 0x2ab   :  { %1175 = vxpose.xlu0.b32.start.end [1/1] (short) %v1140_v5, 128 }
 0x2ac   :  { %485 = vxpose.xlu1.b32.cont [3/16] (narrow) %v2373_v54, 8 }
 0x2ad   :  { %v628_v7 = vpop.trf.xlu1 }
 0x2ae   :  { %1952 = vmatprep.mubr.msk.f32.mxu1 %vm126_vm0, %v628_v7 }
 0x2b0   :  { %486 = vxpose.xlu1.b32.cont [4/16] (narrow) %v2371_v53, 8 }
 0x2b1   :  { %v629_v52 = vpop.trf.xlu1 }
 0x2b2   :  { %1953 = vmatmul.mubr.msk.f32.gmra.mxu1 %vm126_vm0, %v629_v52 }
 0x2b4   :  { %487 = vxpose.xlu1.b32.cont [5/16] (narrow) %v2377_v56, 8 }
 0x2b5   :  { %v630_v8 = vpop.trf.xlu1 }
 0x2b6   :  { %1955 = vmatprep.mubr.msk.f32.mxu1 %vm126_vm0, %v630_v8 }
 0x2b8   :  { %488 = vxpose.xlu1.b32.cont [6/16] (narrow) %v2375_v55, 8 }
 0x2b9   :  { %v631_v0 = vpop.trf.xlu1 }
 0x2ba   :  { %1956 = vmatmul.mubr.msk.f32.gmra.mxu1 %vm126_vm0, %v631_v0 }
 0x2bc   :  { %489 = vxpose.xlu1.b32.cont [7/16] (narrow) %v2381_v58, 8 }
 0x2bd   :  { %v632_v51 = vpop.trf.xlu1 }
 0x2be   :  { %1958 = vmatprep.mubr.msk.f32.mxu1 %vm126_vm0, %v632_v51 }
 0x2c0   :  { %490 = vxpose.xlu1.b32.cont [8/16] (narrow) %v2379_v57, 8 }
 0x2c1   :  { %v633_v53 = vpop.trf.xlu1 }
 0x2c2   :  { %1959 = vmatmul.mubr.msk.f32.gmra.mxu1 %vm126_vm0, %v633_v53 }
 0x2c4   :  { %491 = vxpose.xlu1.b32.cont [9/16] (narrow) %v2385_v60, 8 }
 0x2c5   :  { %v634_v54 = vpop.trf.xlu1 }
 0x2c6   :  { %1961 = vmatprep.mubr.msk.f32.mxu1 %vm126_vm0, %v634_v54 }
 0x2c8   :  { %492 = vxpose.xlu1.b32.cont [10/16] (narrow) %v2383_v59, 8 }
 0x2c9   :  { %v635_v55 = vpop.trf.xlu1 }
 0x2ca   :  { %1962 = vmatmul.mubr.msk.f32.gmra.mxu1 %vm126_vm0, %v635_v55 }
 0x2cc   :  { %493 = vxpose.xlu1.b32.cont [11/16] (narrow) %v2389_v62, 8 }
 0x2cd   :  { %v636_v56 = vpop.trf.xlu1 }
 0x2ce   :  { %1964 = vmatprep.mubr.msk.f32.mxu1 %vm126_vm0, %v636_v56 }
 0x2d0   :  { %494 = vxpose.xlu1.b32.cont [12/16] (narrow) %v2387_v61, 8 }
 0x2d1   :  { %v637_v57 = vpop.trf.xlu1 }
 0x2d2   :  { %1965 = vmatmul.mubr.msk.f32.gmra.mxu1 %vm126_vm0, %v637_v57 }
 0x2d4   :  { %495 = vxpose.xlu1.b32.cont [13/16] (narrow) %v2393_v1, 8 }
 0x2d5   :  { %v638_v58 = vpop.trf.xlu1 }
 0x2d6   :  { %1967 = vmatprep.mubr.msk.f32.mxu1 %vm126_vm0, %v638_v58 }
 0x2d8   :  { %496 = vxpose.xlu1.b32.cont [14/16] (narrow) %v2391_v63, 8 }
 0x2d9   :  { %v639_v59 = vpop.trf.xlu1 }
 0x2da   :  { %1968 = vmatmul.mubr.msk.f32.gmra.mxu1 %vm126_vm0, %v639_v59 }
 0x2db   :  { %1970 = vmatprep.mubr.msk.f32.mxu1 %vm126_vm0, %v2401_v24 }
 0x2dc   :  { %497 = vxpose.xlu1.b32.cont [15/16] (narrow) %v2397_v4, 8 }
 0x2de   :  { %1971 = vmatmul.mubr.msk.f32.gmra.mxu1 %vm126_vm0, %v2403_v25 }
 0x2df   :  { %1973 = vmatprep.mubr.msk.f32.mxu1 %vm126_vm0, %v2406_v27 }
 0x2e0   :  { %498 = vxpose.xlu1.b32.end [16/16] (narrow) %v2395_v2, 8 }
 0x2e2   :  { %1974 = vmatmul.mubr.msk.f32.gmra.mxu1 %vm126_vm0, %v2408_v28 }
 0x2e3   :  { %1976 = vmatprep.mubr.msk.f32.mxu1 %vm126_vm0, %v2410_v29 }
 0x2e6   :  { %1977 = vmatmul.mubr.msk.f32.gmra.mxu1 %vm126_vm0, %v2412_v30 }
 0x2e7   :  { %1979 = vmatprep.mubr.msk.f32.mxu1 %vm126_vm0, %v2414_v31 }
 0x2ea   :  { %1980 = vmatmul.mubr.msk.f32.gmra.mxu1 %vm126_vm0, %v2416_v32  ;;  %v1159_v60 = vpop.trf.xlu0 }
 0x2eb   :  { %1982 = vmatprep.mubr.msk.f32.mxu1 %vm126_vm0, %v2418_v34  ;;  %2031 = vmatprep.mubr.msk.f32.mxu0 %vm126_vm0, %v1159_v60 }
 0x2ee   :  { %1983 = vmatmul.mubr.msk.f32.gmra.mxu1 %vm126_vm0, %v2423_v39  ;;  %v1160_v61 = vpop.trf.xlu0 }
 0x2ef   :  { %1985 = vmatprep.mubr.msk.f32.mxu1 %vm126_vm0, %v2425_v40  ;;  %2032 = vmatmul.mubr.msk.f32.vlgmr.msra.gmra.mxu0 %vm126_vm0, %v1160_v61 }
 0x2f2   :  { %1986 = vmatmul.mubr.msk.f32.gmra.mxu1 %vm126_vm0, %v2430_v42  ;;  %v1161_v62 = vpop.trf.xlu0 }
 0x2f3   :  { %1988 = vmatprep.mubr.msk.f32.mxu1 %vm126_vm0, %v2432_v43  ;;  %2034 = vmatprep.mubr.msk.f32.mxu0 %vm126_vm0, %v1161_v62 }
 0x2f6   :  { %1989 = vmatmul.mubr.msk.f32.gmra.mxu1 %vm126_vm0, %v2434_v44  ;;  %v1162_v63 = vpop.trf.xlu0 }
 0x2f7   :  { %1991 = vmatprep.mubr.msk.f32.mxu1 %vm126_vm0, %v2436_v45  ;;  %2035 = vmatmul.mubr.msk.f32.gmra.mxu0 %vm126_vm0, %v1162_v63 }
 0x2fa   :  { %1992 = vmatmul.mubr.msk.f32.gmra.mxu1 %vm126_vm0, %v2438_v3  ;;  %v1163_v1 = vpop.trf.xlu0 }
 0x2fb   :  { %2037 = vmatprep.mubr.msk.f32.mxu0 %vm126_vm0, %v1163_v1 }
 0x2fe   :  { %v1164_v2 = vpop.trf.xlu0 }
 0x2ff   :  { %2038 = vmatmul.mubr.msk.f32.gmra.mxu0 %vm126_vm0, %v1164_v2 }
 0x302   :  { %v1165_v4 = vpop.trf.xlu0 }
 0x303   :  { %2040 = vmatprep.mubr.msk.f32.mxu0 %vm126_vm0, %v1165_v4 }
 0x306   :  { %v1166_v9 = vpop.trf.xlu0 }
 0x307   :  { %2041 = vmatmul.mubr.msk.f32.gmra.mxu0 %vm126_vm0, %v1166_v9 }
 0x30a   :  { %v1167_v10 = vpop.trf.xlu0 }
 0x30b   :  { %2043 = vmatprep.mubr.msk.f32.mxu0 %vm126_vm0, %v1167_v10 }
 0x30e   :  { %v1168_v11 = vpop.trf.xlu0 }
 0x30f   :  { %2044 = vmatmul.mubr.msk.f32.gmra.mxu0 %vm126_vm0, %v1168_v11 }
 0x312   :  { %v1169_v12 = vpop.trf.xlu0 }
 0x313   :  { %2046 = vmatprep.mubr.msk.f32.mxu0 %vm126_vm0, %v1169_v12 }
 0x316   :  { %v1170_v13 = vpop.trf.xlu0 }
 0x317   :  { %2047 = vmatmul.mubr.msk.f32.gmra.mxu0 %vm126_vm0, %v1170_v13 }
 0x31a   :  { %v1171_v14 = vpop.trf.xlu0 }
 0x31b   :  { %2049 = vmatprep.mubr.msk.f32.mxu0 %vm126_vm0, %v1171_v14 }
 0x31e   :  { %v1172_v15 = vpop.trf.xlu0 }
 0x31f   :  { %2050 = vmatmul.mubr.msk.f32.gmra.mxu0 %vm126_vm0, %v1172_v15 }
 0x322   :  { %v1173_v16 = vpop.trf.xlu0 }
 0x323   :  { %2052 = vmatprep.mubr.msk.f32.mxu0 %vm126_vm0, %v1173_v16 }
 0x326   :  { %v1174_v17 = vpop.trf.xlu0 }
 0x327   :  { %2053 = vmatmul.mubr.msk.f32.gmra.mxu0 %vm126_vm0, %v1174_v17 }
 0x32a   :  { %v1191_v18 = vpop.trf.xlu0 }
 0x32b   :  { %2055 = vmatprep.mubr.msk.f32.mxu0 %vm126_vm0, %v1191_v18 }
 0x32e   :  { %v1192_v19 = vpop.trf.xlu0 }
 0x32f   :  { %2056 = vmatmul.mubr.msk.f32.gmra.mxu0 %vm126_vm0, %v1192_v19 }
 0x332   :  { %v1193_v20 = vpop.trf.xlu0 }
 0x333   :  { %2058 = vmatprep.mubr.msk.f32.mxu0 %vm126_vm0, %v1193_v20 }
 0x336   :  { %v1194_v21 = vpop.trf.xlu0 }
 0x337   :  { %2059 = vmatmul.mubr.msk.f32.gmra.mxu0 %vm126_vm0, %v1194_v21 }
 0x33a   :  { %v1195_v22 = vpop.trf.xlu0 }
 0x33b   :  { %2061 = vmatprep.mubr.msk.f32.mxu0 %vm126_vm0, %v1195_v22 }
 0x33e   :  { %v1196_v23 = vpop.trf.xlu0 }
 0x33f   :  { %2062 = vmatmul.mubr.msk.f32.gmra.mxu0 %vm126_vm0, %v1196_v23 }
 0x342   :  { %v1197_v24 = vpop.trf.xlu0 }
 0x343   :  { %2064 = vmatprep.mubr.msk.f32.mxu0 %vm126_vm0, %v1197_v24 }
 0x346   :  { %v1198_v25 = vpop.trf.xlu0 }
 0x347   :  { %2065 = vmatmul.mubr.msk.f32.gmra.mxu0 %vm126_vm0, %v1198_v25 }
 0x34a   :  { %v1199_v27 = vpop.trf.xlu0 }
 0x34b   :  { %2067 = vmatprep.mubr.msk.f32.mxu0 %vm126_vm0, %v1199_v27 }
 0x34e   :  { %v1200_v28 = vpop.trf.xlu0 }
 0x34f   :  { %2068 = vmatmul.mubr.msk.f32.gmra.mxu0 %vm126_vm0, %v1200_v28 }
 0x352   :  { %v1201_v29 = vpop.trf.xlu0 }
 0x353   :  { %2070 = vmatprep.mubr.msk.f32.mxu0 %vm126_vm0, %v1201_v29 }
 0x356   :  { %v1202_v30 = vpop.trf.xlu0 }
 0x357   :  { %2071 = vmatmul.mubr.msk.f32.gmra.mxu0 %vm126_vm0, %v1202_v30 }
 0x35a   :  { %v1203_v31 = vpop.trf.xlu0 }
 0x35b   :  { %2073 = vmatprep.mubr.msk.f32.mxu0 %vm126_vm0, %v1203_v31 }
 0x35e   :  { %v1204_v32 = vpop.trf.xlu0 }
 0x35f   :  { %2074 = vmatmul.mubr.msk.f32.gmra.mxu0 %vm126_vm0, %v1204_v32 }
 0x362   :  { %v1948_v33 = vpop.f32.mrf.mxu1  ;;  %v1205_v34 = vpop.trf.xlu0 }
 0x363   :  { %2076 = vmatprep.mubr.msk.f32.mxu0 %vm126_vm0, %v1205_v34 }
 0x364   :  { %v837_v35 = vpop.f32.mrf.mxu1 }
 0x365   :  { %996 = vxpose.xlu0.b32.start [1/16] (narrow) %v837_v35, 8 }
 0x366   :  { %v1206_v36 = vpop.trf.xlu0 }
 0x367   :  { %2077 = vmatmul.mubr.msk.f32.gmra.mxu0 %vm126_vm0, %v1206_v36 }
 0x369   :  { %997 = vxpose.xlu0.b32.cont [2/16] (narrow) %v1948_v33, 8 }
 0x36a   :  { %v1951_v37 = vpop.f32.mrf.mxu1 }
 0x36c   :  { %v847_v38 = vpop.f32.mrf.mxu1 }
 0x36d   :  { %998 = vxpose.xlu0.b32.cont [3/16] (narrow) %v847_v38, 8 }
 0x371   :  { %999 = vxpose.xlu0.b32.cont [4/16] (narrow) %v1951_v37, 8 }
 0x372   :  { %v1954_v39 = vpop.f32.mrf.mxu1 }
 0x374   :  { %v857_v40 = vpop.f32.mrf.mxu1 }
 0x375   :  { %1000 = vxpose.xlu0.b32.cont [5/16] (narrow) %v857_v40, 8 }
 0x379   :  { %1001 = vxpose.xlu0.b32.cont [6/16] (narrow) %v1954_v39, 8 }
 0x37a   :  { %v1957_v41 = vpop.f32.mrf.mxu1 }
 0x37c   :  { %v867_v42 = vpop.f32.mrf.mxu1 }
 0x37d   :  { %1002 = vxpose.xlu0.b32.cont [7/16] (narrow) %v867_v42, 8 }
 0x381   :  { %1003 = vxpose.xlu0.b32.cont [8/16] (narrow) %v1957_v41, 8  ;;  %v1601_v41 = vpop.permute.xlu1 %1600 }
 0x382   :  { %v1960_v43 = vpop.f32.mrf.mxu1 }
 0x384   :  { %v877_v44 = vpop.f32.mrf.mxu1 }
 0x385   :  { %1004 = vxpose.xlu0.b32.cont [9/16] (narrow) %v877_v44, 8 }
 0x389   :  { %1005 = vxpose.xlu0.b32.cont [10/16] (narrow) %v1960_v43, 8 }
 0x38a   :  { %v1963_v45 = vpop.f32.mrf.mxu1 }
 0x38c   :  { %v887_v3 = vpop.f32.mrf.mxu1 }
 0x38d   :  { %1006 = vxpose.xlu0.b32.cont [11/16] (narrow) %v887_v3, 8 }
 0x391   :  { %1007 = vxpose.xlu0.b32.cont [12/16] (narrow) %v1963_v45, 8 }
 0x392   :  { %v1966_v47 = vpop.f32.mrf.mxu1 }
 0x394   :  { %v897_v48 = vpop.f32.mrf.mxu1 }
 0x395   :  { %1008 = vxpose.xlu0.b32.cont [13/16] (narrow) %v897_v48, 8 }
 0x399   :  { %1009 = vxpose.xlu0.b32.cont [14/16] (narrow) %v1966_v47, 8 }
 0x39a   :  { %v1969_v49 = vpop.f32.mrf.mxu1 }
 0x39c   :  { %v907_v50 = vpop.f32.mrf.mxu1 }
 0x39d   :  { %1010 = vxpose.xlu0.b32.cont [15/16] (narrow) %v907_v50, 8 }
 0x39e   :  { %v1972_v5 = vpop.f32.mrf.mxu1 }
 0x3a0   :  { %v917_v6 = vpop.f32.mrf.mxu1 }
 0x3a1   :  { %1028 = vxpose.xlu1.b32.start [1/16] (narrow) %v917_v6, 8  ;;  %1011 = vxpose.xlu0.b32.end [16/16] (narrow) %v1969_v49, 8 }
 0x3a2   :  { %v1975_v7 = vpop.f32.mrf.mxu1 }
 0x3a4   :  { %v927_v52 = vpop.f32.mrf.mxu1 }
 0x3a5   :  { %1029 = vxpose.xlu1.b32.cont [2/16] (narrow) %v1972_v5, 8 }
 0x3a6   :  { %v1978_v8 = vpop.f32.mrf.mxu1 }
 0x3a8   :  { %v937_v51 = vpop.f32.mrf.mxu1 }
 0x3a9   :  { %1030 = vxpose.xlu1.b32.cont [3/16] (narrow) %v927_v52, 8 }
 0x3aa   :  { %v1981_v54 = vpop.f32.mrf.mxu1 }
 0x3ac   :  { %v947_v56 = vpop.f32.mrf.mxu1 }
 0x3ad   :  { %1031 = vxpose.xlu1.b32.cont [4/16] (narrow) %v1975_v7, 8 }
 0x3ae   :  { %v1984_v58 = vpop.f32.mrf.mxu1 }
 0x3af   :  { %v2033_v0 = vpop.f32.mrf.mxu0 }
 0x3b0   :  { %v957_v60 = vpop.f32.mrf.mxu1 }
 0x3b1   :  { %1032 = vxpose.xlu1.b32.cont [5/16] (narrow) %v937_v51, 8  ;;  %v1372_v53 = vpop.f32.mrf.mxu0 }
 0x3b2   :  { %1531 = vxpose.xlu0.b32.start [1/16] (narrow) %v1372_v53, 8  ;;  %v1987_v62 = vpop.f32.mrf.mxu1 }
 0x3b4   :  { %v967_v1 = vpop.f32.mrf.mxu1 }
 0x3b5   :  { %1033 = vxpose.xlu1.b32.cont [6/16] (narrow) %v1978_v8, 8 }
 0x3b6   :  { %1532 = vxpose.xlu0.b32.cont [2/16] (narrow) %v2033_v0, 8  ;;  %v1990_v4 = vpop.f32.mrf.mxu1 }
 0x3b7   :  { %v2036_v55 = vpop.f32.mrf.mxu0 }
 0x3b8   :  { %v977_v10 = vpop.f32.mrf.mxu1 }
 0x3b9   :  { %1034 = vxpose.xlu1.b32.cont [7/16] (narrow) %v947_v56, 8  ;;  %v1382_v57 = vpop.f32.mrf.mxu0 }
 0x3ba   :  { %1533 = vxpose.xlu0.b32.cont [3/16] (narrow) %v1382_v57, 8  ;;  %v1993_v12 = vpop.f32.mrf.mxu1 }
 0x3bc   :  { %v987_v14 = vpop.f32.mrf.mxu1 }
 0x3bd   :  { %1035 = vxpose.xlu1.b32.cont [8/16] (narrow) %v1981_v54, 8 }
 0x3be   :  { %1534 = vxpose.xlu0.b32.cont [4/16] (narrow) %v2036_v55, 8 }
 0x3bf   :  { %v2039_v59 = vpop.f32.mrf.mxu0 }
 0x3c1   :  { %1036 = vxpose.xlu1.b32.cont [9/16] (narrow) %v957_v60, 8  ;;  %v1392_v61 = vpop.f32.mrf.mxu0 }
 0x3c2   :  { %1535 = vxpose.xlu0.b32.cont [5/16] (narrow) %v1392_v61, 8 }
 0x3c5   :  { %1037 = vxpose.xlu1.b32.cont [10/16] (narrow) %v1984_v58, 8 }
 0x3c6   :  { %1536 = vxpose.xlu0.b32.cont [6/16] (narrow) %v2039_v59, 8 }
 0x3c7   :  { %v2042_v63 = vpop.f32.mrf.mxu0 }
 0x3c9   :  { %1038 = vxpose.xlu1.b32.cont [11/16] (narrow) %v967_v1, 8  ;;  %v1402_v2 = vpop.f32.mrf.mxu0 }
 0x3ca   :  { %1537 = vxpose.xlu0.b32.cont [7/16] (narrow) %v1402_v2, 8 }
 0x3cd   :  { %1039 = vxpose.xlu1.b32.cont [12/16] (narrow) %v1987_v62, 8 }
 0x3ce   :  { %1538 = vxpose.xlu0.b32.cont [8/16] (narrow) %v2042_v63, 8 }
 0x3cf   :  { %v2045_v9 = vpop.f32.mrf.mxu0 }
 0x3d1   :  { %1040 = vxpose.xlu1.b32.cont [13/16] (narrow) %v977_v10, 8  ;;  %v1412_v11 = vpop.f32.mrf.mxu0 }
 0x3d2   :  { %1539 = vxpose.xlu0.b32.cont [9/16] (narrow) %v1412_v11, 8 }
 0x3d5   :  { %1041 = vxpose.xlu1.b32.cont [14/16] (narrow) %v1990_v4, 8 }
 0x3d6   :  { %1540 = vxpose.xlu0.b32.cont [10/16] (narrow) %v2045_v9, 8 }
 0x3d7   :  { %v2048_v13 = vpop.f32.mrf.mxu0 }
 0x3d9   :  { %1042 = vxpose.xlu1.b32.cont [15/16] (narrow) %v987_v14, 8  ;;  %v1422_v15 = vpop.f32.mrf.mxu0 }
 0x3da   :  { %1541 = vxpose.xlu0.b32.cont [11/16] (narrow) %v1422_v15, 8 }
 0x3dd   :  { %1043 = vxpose.xlu1.b32.end [16/16] (narrow) %v1993_v12, 8 }
 0x3de   :  { %1542 = vxpose.xlu0.b32.cont [12/16] (narrow) %v2048_v13, 8 }
 0x3df   :  { %v2051_v16 = vpop.f32.mrf.mxu0 }
 0x3e1   :  { %v1432_v17 = vpop.f32.mrf.mxu0  ;;  %v1012_v37 = vpop.trf.xlu0 }
 0x3e2   :  { %1543 = vxpose.xlu0.b32.cont [13/16] (narrow) %v1432_v17, 8  ;;  %v1060_v38 = vadd.f32 %v1012_v37, %v2440_v46 }
 0x3e6   :  { %1544 = vxpose.xlu0.b32.cont [14/16] (narrow) %v2051_v16, 8 }
 0x3e7   :  { %v2054_v18 = vpop.f32.mrf.mxu0 }
 0x3e9   :  { %v1442_v19 = vpop.f32.mrf.mxu0 }
 0x3ea   :  { %1545 = vxpose.xlu0.b32.cont [15/16] (narrow) %v1442_v19, 8 }
 0x3ee   :  { %1546 = vxpose.xlu0.b32.end [16/16] (narrow) %v2054_v18, 8 }
 0x3ef   :  { %v2057_v20 = vpop.f32.mrf.mxu0 }
 0x3f1   :  { %v1452_v21 = vpop.f32.mrf.mxu0 }
 0x3f2   :  { %1563 = vxpose.xlu1.b32.start [1/16] (narrow) %v1452_v21, 8 }
 0x3f6   :  { %1564 = vxpose.xlu1.b32.cont [2/16] (narrow) %v2057_v20, 8 }
 0x3f7   :  { %v2060_v22 = vpop.f32.mrf.mxu0 }
 0x3f9   :  { %v1462_v23 = vpop.f32.mrf.mxu0 }
 0x3fa   :  { %1565 = vxpose.xlu1.b32.cont [3/16] (narrow) %v1462_v23, 8 }
 0x3fe   :  { %1566 = vxpose.xlu1.b32.cont [4/16] (narrow) %v2060_v22, 8 }
 0x3ff   :  { %v2063_v24 = vpop.f32.mrf.mxu0 }
 0x401   :  { %v1472_v25 = vpop.f32.mrf.mxu0 }
 0x402   :  { %1567 = vxpose.xlu1.b32.cont [5/16] (narrow) %v1472_v25, 8 }
 0x406   :  { %1568 = vxpose.xlu1.b32.cont [6/16] (narrow) %v2063_v24, 8 }
 0x407   :  { %v2066_v27 = vpop.f32.mrf.mxu0 }
 0x409   :  { %v1482_v28 = vpop.f32.mrf.mxu0 }
 0x40a   :  { %1569 = vxpose.xlu1.b32.cont [7/16] (narrow) %v1482_v28, 8 }
 0x40e   :  { %1570 = vxpose.xlu1.b32.cont [8/16] (narrow) %v2066_v27, 8 }
 0x40f   :  { %v2069_v29 = vpop.f32.mrf.mxu0 }
 0x411   :  { %v1492_v30 = vpop.f32.mrf.mxu0 }
 0x412   :  { %1571 = vxpose.xlu1.b32.cont [9/16] (narrow) %v1492_v30, 8 }
 0x416   :  { %1572 = vxpose.xlu1.b32.cont [10/16] (narrow) %v2069_v29, 8 }
 0x417   :  { %v2072_v31 = vpop.f32.mrf.mxu0  ;;  %2090 = vset.pattern.permute.xlu0 %v2182_v26  ;;  %v499_v26 = vpop.trf.xlu1 }
 0x419   :  { %v1502_v32 = vpop.f32.mrf.mxu0 }
 0x41a   :  { %1573 = vxpose.xlu1.b32.cont [11/16] (narrow) %v1502_v32, 8 }
 0x41d   :  { %v1044_v43 = vpop.trf.xlu1 }
 0x41e   :  { %1574 = vxpose.xlu1.b32.cont [12/16] (narrow) %v2072_v31, 8  ;;  %v1061_v44 = vadd.f32 %v1044_v43, %v499_v26 }
 0x41f   :  { %v2075_v33 = vpop.f32.mrf.mxu0 }
 0x421   :  { %v1512_v34 = vpop.f32.mrf.mxu0 }
 0x422   :  { %1575 = vxpose.xlu1.b32.cont [13/16] (narrow) %v1512_v34, 8 }
 0x426   :  { %1576 = vxpose.xlu1.b32.cont [14/16] (narrow) %v2075_v33, 8 }
 0x427   :  { %v2078_v35 = vpop.f32.mrf.mxu0 }
 0x429   :  { %v1522_v36 = vpop.f32.mrf.mxu0 }
 0x42a   :  { %1577 = vxpose.xlu1.b32.cont [15/16] (narrow) %v1522_v36, 8 }
 0x42e   :  { %1578 = vxpose.xlu1.b32.end [16/16] (narrow) %v2078_v35, 8  ;;  %v1547_v39 = vpop.trf.xlu0 }
 0x42f   :  { %v1595_v40 = vadd.f32 %v1547_v39, %v1060_v38 }
 0x431   :  { %v1603_v42 = vadd.f32 %v1601_v41, %v1595_v40 }
 0x433   :  { %1605 = vst [vmem:[#allocation8] sm:$0xff] %v1603_v42 }
 0x46e   :  { %v1579_v45 = vpop.trf.xlu1 }
 0x46f   :  { %v1596_v3 = vadd.f32 %v1579_v45, %v1061_v44 }
 0x471   :  { %v1604_v47 = vadd.f32 %v1601_v41, %v1596_v3 }
 0x473   :  { %1606 = vst [vmem:[#allocation8 + $0x8] sm:$0xff] %v1604_v47 }
 0x474   :  { %2162 = shalt.err (!%p2159_p5)
}
 0x475   :  { %1618 = dma.vmem_to_hbm [thread:$0]  %s1613_s5, 256, %s2551_s4, [#allocation4], %s2179_s20, %s2179_s20, %s2180_s21  }
 0x476   :  { %2175 = dma.done.wait [#allocation4], 256  }
 0x477   :  { %2176 = vsyncadd [#allocation4], 4294967040 }
 0x478   :  { %1622 = vsyncpa [#allocation3], 1 }
 0x479   :  { %1623 = vsyncpa [#allocation6], 1 }
 0x47a   :  { %1624 = vsyncpa [#allocation4], 1 }

</bundles_post_ra>
